<compile_context>
chip_gen: v6e
topology: v6e:2x2x1
jax: 0.10.0
libtpu: 0.0.40
codegen_flags: <defaults>
</compile_context>

<pallas_src>
import functools

import numpy as np
import jax
import jax.numpy as jnp
from jax import lax
from jax.experimental import pallas as pl
from jax.experimental.pallas import tpu as pltpu


def _fused_kernel(patch_ref, w1a_ref, w2a_ref, mask_ref, out_ref, tap_ref,
                  *, W, slot):
    """Fused conv1 + relu + conv2 (+residual, +biases folded) + softmax.

    Layout: channels on sublanes, flattened (batch, H, W) on lanes.

    patch_ref : (9*Cin + 1, B*H*W)  im2col'd conv1 input, last row = 1.0 (b1)
    w1a_ref   : (C1, 9*Cin + 1)     conv1 weights with b1 as last column
    w2a_ref   : (C1, 9*slot)        conv2 weights, one 16-wide slot per tap;
                                    center slot has +I (residual), col C1 of
                                    slot 0 holds b2
    mask_ref  : (9, 1, B*H*W)       per-tap zero-padding border masks
    out_ref   : (C1, B*H*W)         softmax output (lane-dense)
    tap_ref   : (9*slot, B*H*W)     VMEM scratch: stacked conv2 taps
    """
    C1, HWB = out_ref.shape

    # ---- conv1 (+b1 folded): one im2col matmul, K = 9*Cin + 1 ---------------
    y1 = jnp.dot(w1a_ref[...], patch_ref[...],
                 preferred_element_type=jnp.float32)            # (C1, HWB)
    x_resid = jnp.maximum(y1, 0.0)                              # relu

    # ---- conv2 taps: XLU lane-rolls + border masks, stacked in VMEM ---------
    tap_ref[...] = jnp.zeros_like(tap_ref)                      # clear pad rows
    for kh in range(3):
        for kw in range(3):
            dh, dw = kh - 1, kw - 1
            t = kh * 3 + kw
            if dh == 0 and dw == 0:
                tap = x_resid                                   # center tap
            else:
                shift = (-(dh * W + dw)) % HWB                  # static rotate
                tap = pltpu.roll(x_resid, shift, axis=1) * mask_ref[t]
            tap_ref[pl.ds(t * slot, C1), :] = tap
    # constant-1 sublane (slot 0, row C1) carries the conv2 bias column.
    tap_ref[pl.ds(C1, 1), :] = jnp.ones((1, HWB), jnp.float32)

    # ---- conv2 + residual + b2: ONE stacked-K matmul (K = 9*slot) -----------
    y2 = jnp.dot(w2a_ref[...], tap_ref[...],
                 preferred_element_type=jnp.float32)            # (C1, HWB)

    # ---- softmax over channels (sublane axis) -------------------------------
    m = jnp.max(y2, axis=0, keepdims=True)
    e = jnp.exp(y2 - m)
    denom = jnp.sum(e, axis=0, keepdims=True)
    out_ref[...] = e * pl.reciprocal(denom, approx=True)


@jax.jit
def dummy_model_forward(x_nchw, params):
    """Fused DummyModel forward. Input/output are NCHW like PyTorch."""
    w1, b1, w2, b2 = params            # HWIO conv weights, (C1,) biases
    B, Cin, H, W = x_nchw.shape
    C1 = w1.shape[-1]
    HW = H * W
    HWB = B * HW
    SLOT = ((C1 + 1 + 7) // 8) * 8     # 16-sublane-aligned tap slot (> C1)

    # ---- wrapper-side plumbing (tiny arrays, fully fused under jit) ---------
    xf = x_nchw.astype(jnp.float32)
    x_nhwc = jnp.transpose(xf, (0, 2, 3, 1))
    x_pad = jnp.pad(x_nhwc, ((0, 0), (1, 1), (1, 1), (0, 0)))

    # im2col for conv1, tap-major / in-channel-minor along K, batch folded
    # into the lane axis (batch-major): (9*Cin, B*HW).
    taps = [x_pad[:, kh:kh + H, kw:kw + W, :]
            for kh in range(3) for kw in range(3)]
    patches = jnp.concatenate(taps, axis=-1).reshape(B, HW, 9 * Cin)
    patches_t = jnp.transpose(patches, (2, 0, 1)).reshape(9 * Cin, HWB)
    patch_aug = jnp.concatenate(
        [patches_t, jnp.ones((1, HWB), jnp.float32)], axis=0)   # +1 row for b1

    # conv1 weights with b1 folded as an extra column.
    w1_aug = jnp.concatenate(
        [jnp.transpose(w1.reshape(9 * Cin, C1)), b1.reshape(C1, 1)], axis=1)

    # conv2 weights: per-tap (out, in), residual folded into the center tap,
    # flattened into 16-wide slots matching the in-kernel tap stack, b2 folded
    # as the column hit by the constant-1 sublane (slot 0, row C1).
    w2t = jnp.transpose(w2.reshape(9, C1, C1), (0, 2, 1))       # (9, out, in)
    w2t = w2t.at[4].add(jnp.eye(C1, dtype=jnp.float32))         # + residual
    w2_pad = jnp.pad(w2t, ((0, 0), (0, 0), (0, SLOT - C1)))     # (9, C1, SLOT)
    w2_flat = jnp.transpose(w2_pad, (1, 0, 2)).reshape(C1, 9 * SLOT)
    w2_flat = w2_flat.at[:, C1].set(b2)                         # + b2

    # Per-tap border masks (numpy -> compile-time constants), tiled over batch.
    ii, jj = np.meshgrid(np.arange(H), np.arange(W), indexing="ij")
    masks_np = np.stack(
        [((ii + kh - 1 >= 0) & (ii + kh - 1 < H) &
          (jj + kw - 1 >= 0) & (jj + kw - 1 < W)).reshape(HW)
         for kh in range(3) for kw in range(3)],
        axis=0).astype(np.float32)                              # (9, HW)
    masks = jnp.asarray(np.tile(masks_np, (1, B)).reshape(9, 1, HWB))

    kernel = functools.partial(_fused_kernel, W=W, slot=SLOT)

    out = pl.pallas_call(
        kernel,
        out_shape=jax.ShapeDtypeStruct((C1, HWB), jnp.float32),
        grid_spec=pltpu.PrefetchScalarGridSpec(
            num_scalar_prefetch=0,
            grid=(1,),
            in_specs=[
                pl.BlockSpec((9 * Cin + 1, HWB), lambda i: (0, 0)),
                pl.BlockSpec((C1, 9 * Cin + 1), lambda i: (0, 0)),
                pl.BlockSpec((C1, 9 * SLOT), lambda i: (0, 0)),
                pl.BlockSpec((9, 1, HWB), lambda i: (0, 0, 0)),
            ],
            out_specs=pl.BlockSpec((C1, HWB), lambda i: (0, 0)),
            scratch_shapes=[pltpu.VMEM((9 * SLOT, HWB), jnp.float32)],
        ),
        compiler_params=pltpu.CompilerParams(
            dimension_semantics=("arbitrary",)),
    )(patch_aug, w1_aug, w2_flat, masks)

    # (C1, B*HW) channel-major -> NCHW (cheap, fused under jit).
    return jnp.transpose(out.reshape(C1, B, H, W), (1, 0, 2, 3))


def _reference_forward(x_nchw, params):
    """Pure-JAX reference for verification."""
    w1, b1, w2, b2 = params
    dn = ("NHWC", "HWIO", "NHWC")
    x = jnp.transpose(x_nchw, (0, 2, 3, 1)).astype(jnp.float32)
    y1 = lax.conv_general_dilated(x, w1, (1, 1), "SAME",
                                  dimension_numbers=dn) + b1.reshape(1, 1, 1, -1)
    r = jnp.maximum(y1, 0.0)
    y2 = lax.conv_general_dilated(r, w2, (1, 1), "SAME",
                                  dimension_numbers=dn) + b2.reshape(1, 1, 1, -1)
    s = y2 + r
    sm = jax.nn.softmax(s, axis=-1)
    return jnp.transpose(sm, (0, 3, 1, 2))


def make_params(in_channels=4, out_channels=10):
    """Deterministic synthetic weights (HWIO layout), shapes per DummyModel."""
    k1, k2, k3, k4 = jax.random.split(jax.random.PRNGKey(42), 4)
    w1 = 0.1 * jax.random.normal(k1, (3, 3, in_channels, out_channels), jnp.float32)
    b1 = 0.1 * jax.random.normal(k2, (out_channels,), jnp.float32)
    w2 = 0.1 * jax.random.normal(k3, (3, 3, out_channels, out_channels), jnp.float32)
    b2 = 0.1 * jax.random.normal(k4, (out_channels,), jnp.float32)
    return w1, b1, w2, b2


if __name__ == "__main__":
    B, Cin, H, W = 2, 4, 16, 16
    x = jax.random.normal(jax.random.PRNGKey(0), (B, Cin, H, W), jnp.float32)
    params = make_params(in_channels=Cin, out_channels=10)

    out = jax.block_until_ready(dummy_model_forward(x, params))
    ref = jax.block_until_ready(_reference_forward(x, params))

    assert out.shape == (B, 10, H, W)
    assert jnp.allclose(out, ref, atol=1e-3, rtol=1e-3), float(
        jnp.max(jnp.abs(out - ref)))

    print("KERNEL_OK")
</pallas_src>

<mosaic_0001>
module attributes {stable_mosaic.version = 11 : i64} {
  func.func @_fused_kernel(%arg0: i32, %arg1: memref<37x512xf32, #tpu.memory_space<vmem>>, %arg2: memref<10x37xf32, #tpu.memory_space<vmem>>, %arg3: memref<10x144xf32, #tpu.memory_space<vmem>>, %arg4: memref<9x1x512xf32, #tpu.memory_space<vmem>>, %arg5: memref<10x512xf32, #tpu.memory_space<vmem>>, %arg6: memref<144x512xf32, #tpu.memory_space<vmem>>) attributes {dimension_semantics = [#tpu.dimension_semantics<arbitrary>], iteration_bounds = array<i64: 1>, scalar_prefetch = 0 : i64, scratch_operands = 1 : i64, tpu.core_type = #tpu.core_type<tc>, window_params = [{pipeline_mode = #tpu.pipeline_mode<synchronous>, transform_indices = @transform_0, window_bounds = array<i64: 37, 512>}, {pipeline_mode = #tpu.pipeline_mode<synchronous>, transform_indices = @transform_1, window_bounds = array<i64: 10, 37>}, {pipeline_mode = #tpu.pipeline_mode<synchronous>, transform_indices = @transform_2, window_bounds = array<i64: 10, 144>}, {pipeline_mode = #tpu.pipeline_mode<synchronous>, transform_indices = @transform_3, window_bounds = array<i64: 9, 1, 512>}, {pipeline_mode = #tpu.pipeline_mode<synchronous>, transform_indices = @transform_4, window_bounds = array<i64: 10, 512>}]} {
    %c0 = arith.constant 0 : index
    %c0_0 = arith.constant 0 : index
    %0 = vector.load %arg2[%c0, %c0_0] : memref<10x37xf32, #tpu.memory_space<vmem>>, vector<10x37xf32>
    %c0_1 = arith.constant 0 : index
    %c0_2 = arith.constant 0 : index
    %1 = vector.load %arg1[%c0_1, %c0_2] : memref<37x512xf32, #tpu.memory_space<vmem>>, vector<37x512xf32>
    %cst = arith.constant dense<0.000000e+00> : vector<10x512xf32>
    %2 = tpu.matmul %0, %1, %cst {dimension_numbers = #tpu.dot_dimension_numbers<[1], [0], [0], [1], [0, 0, 1, 1], [], []>} : vector<10x37xf32>, vector<37x512xf32>, vector<10x512xf32> -> vector<10x512xf32>
    %cst_3 = arith.constant 0.000000e+00 : f32
    %3 = vector.broadcast %cst_3 : f32 to vector<10x512xf32>
    %4 = arith.maximumf %2, %3 : vector<10x512xf32>
    %cst_4 = arith.constant 0.000000e+00 : f32
    %5 = vector.broadcast %cst_4 : f32 to vector<144x512xf32>
    %c0_5 = arith.constant 0 : index
    %c0_6 = arith.constant 0 : index
    %6 = vector.load %arg6[%c0_5, %c0_6] : memref<144x512xf32, #tpu.memory_space<vmem>>, vector<144x512xf32>
    tpu.vector_store %arg6[%c0_5, %c0_6], %5 {strides = array<i32>} : memref<144x512xf32, #tpu.memory_space<vmem>>, vector<144x512xf32>,
    %c17_i32 = arith.constant 17 : i32
    %7 = tpu.dynamic_rotate %4 by %c17_i32 dim 1 : vector<10x512xf32>, i32 -> vector<10x512xf32>
    %c0_7 = arith.constant 0 : index
    %c0_8 = arith.constant 0 : index
    %c0_9 = arith.constant 0 : index
    %8 = vector.load %arg4[%c0_7, %c0_8, %c0_9] : memref<9x1x512xf32, #tpu.memory_space<vmem>>, vector<1x1x512xf32>
    %9 = vector.shape_cast %8 : vector<1x1x512xf32> to vector<1x512xf32>
    %10 = vector.broadcast %9 : vector<1x512xf32> to vector<10x512xf32>
    %11 = arith.mulf %7, %10 : vector<10x512xf32>
    %c0_10 = arith.constant 0 : index
    %c0_11 = arith.constant 0 : index
    %12 = vector.load %arg6[%c0_10, %c0_11] : memref<144x512xf32, #tpu.memory_space<vmem>>, vector<10x512xf32>
    tpu.vector_store %arg6[%c0_10, %c0_11], %11 {strides = array<i32>} : memref<144x512xf32, #tpu.memory_space<vmem>>, vector<10x512xf32>,
    %c16_i32 = arith.constant 16 : i32
    %13 = tpu.dynamic_rotate %4 by %c16_i32 dim 1 : vector<10x512xf32>, i32 -> vector<10x512xf32>
    %c1 = arith.constant 1 : index
    %c0_12 = arith.constant 0 : index
    %c0_13 = arith.constant 0 : index
    %14 = vector.load %arg4[%c1, %c0_12, %c0_13] : memref<9x1x512xf32, #tpu.memory_space<vmem>>, vector<1x1x512xf32>
    %15 = vector.shape_cast %14 : vector<1x1x512xf32> to vector<1x512xf32>
    %16 = vector.broadcast %15 : vector<1x512xf32> to vector<10x512xf32>
    %17 = arith.mulf %13, %16 : vector<10x512xf32>
    %c16 = arith.constant 16 : index
    %c0_14 = arith.constant 0 : index
    %18 = vector.load %arg6[%c16, %c0_14] : memref<144x512xf32, #tpu.memory_space<vmem>>, vector<10x512xf32>
    tpu.vector_store %arg6[%c16, %c0_14], %17 {strides = array<i32>} : memref<144x512xf32, #tpu.memory_space<vmem>>, vector<10x512xf32>,
    %c15_i32 = arith.constant 15 : i32
    %19 = tpu.dynamic_rotate %4 by %c15_i32 dim 1 : vector<10x512xf32>, i32 -> vector<10x512xf32>
    %c2 = arith.constant 2 : index
    %c0_15 = arith.constant 0 : index
    %c0_16 = arith.constant 0 : index
    %20 = vector.load %arg4[%c2, %c0_15, %c0_16] : memref<9x1x512xf32, #tpu.memory_space<vmem>>, vector<1x1x512xf32>
    %21 = vector.shape_cast %20 : vector<1x1x512xf32> to vector<1x512xf32>
    %22 = vector.broadcast %21 : vector<1x512xf32> to vector<10x512xf32>
    %23 = arith.mulf %19, %22 : vector<10x512xf32>
    %c32 = arith.constant 32 : index
    %c0_17 = arith.constant 0 : index
    %24 = vector.load %arg6[%c32, %c0_17] : memref<144x512xf32, #tpu.memory_space<vmem>>, vector<10x512xf32>
    tpu.vector_store %arg6[%c32, %c0_17], %23 {strides = array<i32>} : memref<144x512xf32, #tpu.memory_space<vmem>>, vector<10x512xf32>,
    %c1_i32 = arith.constant 1 : i32
    %25 = tpu.dynamic_rotate %4 by %c1_i32 dim 1 : vector<10x512xf32>, i32 -> vector<10x512xf32>
    %c3 = arith.constant 3 : index
    %c0_18 = arith.constant 0 : index
    %c0_19 = arith.constant 0 : index
    %26 = vector.load %arg4[%c3, %c0_18, %c0_19] : memref<9x1x512xf32, #tpu.memory_space<vmem>>, vector<1x1x512xf32>
    %27 = vector.shape_cast %26 : vector<1x1x512xf32> to vector<1x512xf32>
    %28 = vector.broadcast %27 : vector<1x512xf32> to vector<10x512xf32>
    %29 = arith.mulf %25, %28 : vector<10x512xf32>
    %c48 = arith.constant 48 : index
    %c0_20 = arith.constant 0 : index
    %30 = vector.load %arg6[%c48, %c0_20] : memref<144x512xf32, #tpu.memory_space<vmem>>, vector<10x512xf32>
    tpu.vector_store %arg6[%c48, %c0_20], %29 {strides = array<i32>} : memref<144x512xf32, #tpu.memory_space<vmem>>, vector<10x512xf32>,
    %c64 = arith.constant 64 : index
    %c0_21 = arith.constant 0 : index
    %31 = vector.load %arg6[%c64, %c0_21] : memref<144x512xf32, #tpu.memory_space<vmem>>, vector<10x512xf32>
    tpu.vector_store %arg6[%c64, %c0_21], %4 {strides = array<i32>} : memref<144x512xf32, #tpu.memory_space<vmem>>, vector<10x512xf32>,
    %c511_i32 = arith.constant 511 : i32
    %32 = tpu.dynamic_rotate %4 by %c511_i32 dim 1 : vector<10x512xf32>, i32 -> vector<10x512xf32>
    %c5 = arith.constant 5 : index
    %c0_22 = arith.constant 0 : index
    %c0_23 = arith.constant 0 : index
    %33 = vector.load %arg4[%c5, %c0_22, %c0_23] : memref<9x1x512xf32, #tpu.memory_space<vmem>>, vector<1x1x512xf32>
    %34 = vector.shape_cast %33 : vector<1x1x512xf32> to vector<1x512xf32>
    %35 = vector.broadcast %34 : vector<1x512xf32> to vector<10x512xf32>
    %36 = arith.mulf %32, %35 : vector<10x512xf32>
    %c80 = arith.constant 80 : index
    %c0_24 = arith.constant 0 : index
    %37 = vector.load %arg6[%c80, %c0_24] : memref<144x512xf32, #tpu.memory_space<vmem>>, vector<10x512xf32>
    tpu.vector_store %arg6[%c80, %c0_24], %36 {strides = array<i32>} : memref<144x512xf32, #tpu.memory_space<vmem>>, vector<10x512xf32>,
    %c497_i32 = arith.constant 497 : i32
    %38 = tpu.dynamic_rotate %4 by %c497_i32 dim 1 : vector<10x512xf32>, i32 -> vector<10x512xf32>
    %c6 = arith.constant 6 : index
    %c0_25 = arith.constant 0 : index
    %c0_26 = arith.constant 0 : index
    %39 = vector.load %arg4[%c6, %c0_25, %c0_26] : memref<9x1x512xf32, #tpu.memory_space<vmem>>, vector<1x1x512xf32>
    %40 = vector.shape_cast %39 : vector<1x1x512xf32> to vector<1x512xf32>
    %41 = vector.broadcast %40 : vector<1x512xf32> to vector<10x512xf32>
    %42 = arith.mulf %38, %41 : vector<10x512xf32>
    %c96 = arith.constant 96 : index
    %c0_27 = arith.constant 0 : index
    %43 = vector.load %arg6[%c96, %c0_27] : memref<144x512xf32, #tpu.memory_space<vmem>>, vector<10x512xf32>
    tpu.vector_store %arg6[%c96, %c0_27], %42 {strides = array<i32>} : memref<144x512xf32, #tpu.memory_space<vmem>>, vector<10x512xf32>,
    %c496_i32 = arith.constant 496 : i32
    %44 = tpu.dynamic_rotate %4 by %c496_i32 dim 1 : vector<10x512xf32>, i32 -> vector<10x512xf32>
    %c7 = arith.constant 7 : index
    %c0_28 = arith.constant 0 : index
    %c0_29 = arith.constant 0 : index
    %45 = vector.load %arg4[%c7, %c0_28, %c0_29] : memref<9x1x512xf32, #tpu.memory_space<vmem>>, vector<1x1x512xf32>
    %46 = vector.shape_cast %45 : vector<1x1x512xf32> to vector<1x512xf32>
    %47 = vector.broadcast %46 : vector<1x512xf32> to vector<10x512xf32>
    %48 = arith.mulf %44, %47 : vector<10x512xf32>
    %c112 = arith.constant 112 : index
    %c0_30 = arith.constant 0 : index
    %49 = vector.load %arg6[%c112, %c0_30] : memref<144x512xf32, #tpu.memory_space<vmem>>, vector<10x512xf32>
    tpu.vector_store %arg6[%c112, %c0_30], %48 {strides = array<i32>} : memref<144x512xf32, #tpu.memory_space<vmem>>, vector<10x512xf32>,
    %c495_i32 = arith.constant 495 : i32
    %50 = tpu.dynamic_rotate %4 by %c495_i32 dim 1 : vector<10x512xf32>, i32 -> vector<10x512xf32>
    %c8 = arith.constant 8 : index
    %c0_31 = arith.constant 0 : index
    %c0_32 = arith.constant 0 : index
    %51 = vector.load %arg4[%c8, %c0_31, %c0_32] : memref<9x1x512xf32, #tpu.memory_space<vmem>>, vector<1x1x512xf32>
    %52 = vector.shape_cast %51 : vector<1x1x512xf32> to vector<1x512xf32>
    %53 = vector.broadcast %52 : vector<1x512xf32> to vector<10x512xf32>
    %54 = arith.mulf %50, %53 : vector<10x512xf32>
    %c128 = arith.constant 128 : index
    %c0_33 = arith.constant 0 : index
    %55 = vector.load %arg6[%c128, %c0_33] : memref<144x512xf32, #tpu.memory_space<vmem>>, vector<10x512xf32>
    tpu.vector_store %arg6[%c128, %c0_33], %54 {strides = array<i32>} : memref<144x512xf32, #tpu.memory_space<vmem>>, vector<10x512xf32>,
    %cst_34 = arith.constant 1.000000e+00 : f32
    %56 = vector.broadcast %cst_34 : f32 to vector<1x512xf32>
    %c10 = arith.constant 10 : index
    %c0_35 = arith.constant 0 : index
    %57 = vector.load %arg6[%c10, %c0_35] : memref<144x512xf32, #tpu.memory_space<vmem>>, vector<1x512xf32>
    tpu.vector_store %arg6[%c10, %c0_35], %56 {strides = array<i32>} : memref<144x512xf32, #tpu.memory_space<vmem>>, vector<1x512xf32>,
    %c0_36 = arith.constant 0 : index
    %c0_37 = arith.constant 0 : index
    %58 = vector.load %arg3[%c0_36, %c0_37] : memref<10x144xf32, #tpu.memory_space<vmem>>, vector<10x144xf32>
    %c0_38 = arith.constant 0 : index
    %c0_39 = arith.constant 0 : index
    %59 = vector.load %arg6[%c0_38, %c0_39] : memref<144x512xf32, #tpu.memory_space<vmem>>, vector<144x512xf32>
    %cst_40 = arith.constant dense<0.000000e+00> : vector<10x512xf32>
    %60 = tpu.matmul %58, %59, %cst_40 {dimension_numbers = #tpu.dot_dimension_numbers<[1], [0], [0], [1], [0, 0, 1, 1], [], []>} : vector<10x144xf32>, vector<144x512xf32>, vector<10x512xf32> -> vector<10x512xf32>
    %cst_41 = arith.constant dense<0xFF800000> : vector<512xf32>
    %61 = vector.multi_reduction <maximumf>, %60, %cst_41 [0] : vector<10x512xf32> to vector<512xf32>
    %62 = vector.shape_cast %61 : vector<512xf32> to vector<1x512xf32>
    %63 = vector.broadcast %62 : vector<1x512xf32> to vector<10x512xf32>
    %64 = arith.subf %60, %63 : vector<10x512xf32>
    %65 = math.exp %64 : vector<10x512xf32>
    %cst_42 = arith.constant dense<0.000000e+00> : vector<512xf32>
    %66 = vector.multi_reduction <add>, %65, %cst_42 [0] : vector<10x512xf32> to vector<512xf32>
    %67 = vector.shape_cast %66 : vector<512xf32> to vector<1x512xf32>
    %68 = tpu.reciprocal %67 {approx = true} : vector<1x512xf32> -> vector<1x512xf32>
    %69 = vector.broadcast %68 : vector<1x512xf32> to vector<10x512xf32>
    %70 = arith.mulf %65, %69 : vector<10x512xf32>
    %c0_43 = arith.constant 0 : index
    %c0_44 = arith.constant 0 : index
    %71 = vector.load %arg5[%c0_43, %c0_44] : memref<10x512xf32, #tpu.memory_space<vmem>>, vector<10x512xf32>
    tpu.vector_store %arg5[%c0_43, %c0_44], %70 {strides = array<i32>} : memref<10x512xf32, #tpu.memory_space<vmem>>, vector<10x512xf32>,
    return
  }
  func.func @transform_0(%arg0: i32) -> (i32, i32) {
    %c0_i32 = arith.constant 0 : i32
    %c0_i32_0 = arith.constant 0 : i32
    %c0_i32_1 = arith.constant 0 : i32
    return %c0_i32, %c0_i32_0 : i32, i32
  }
  func.func @transform_1(%arg0: i32) -> (i32, i32) {
    %c0_i32 = arith.constant 0 : i32
    %c0_i32_0 = arith.constant 0 : i32
    %c0_i32_1 = arith.constant 0 : i32
    return %c0_i32, %c0_i32_0 : i32, i32
  }
  func.func @transform_2(%arg0: i32) -> (i32, i32) {
    %c0_i32 = arith.constant 0 : i32
    %c0_i32_0 = arith.constant 0 : i32
    %c0_i32_1 = arith.constant 0 : i32
    return %c0_i32, %c0_i32_0 : i32, i32
  }
  func.func @transform_3(%arg0: i32) -> (i32, i32, i32) {
    %c0_i32 = arith.constant 0 : i32
    %c0_i32_0 = arith.constant 0 : i32
    %c0_i32_1 = arith.constant 0 : i32
    %c0_i32_2 = arith.constant 0 : i32
    return %c0_i32, %c0_i32_0, %c0_i32_1 : i32, i32, i32
  }
  func.func @transform_4(%arg0: i32) -> (i32, i32) {
    %c0_i32 = arith.constant 0 : i32
    %c0_i32_0 = arith.constant 0 : i32
    %c0_i32_1 = arith.constant 0 : i32
    return %c0_i32, %c0_i32_0 : i32, i32
  }
}

</mosaic_0001>

<bundles_post_ra>
// kernel: dummy_model_forward.1
= control target key start
LH: loop header
LB: loop body
LE: loop exit
PB: predicated region body
PF: predicated region fallthrough
CT: control target
= control target key end

     0   :  { %vm46_vm0 = vcmask 1044480   ;;  %v1224_v3 = vmov 0.0   ;;  %vm39_vm1 = vcmask 302080   ;;  %s1227_s7 = smov 127   ;;  %s1228_s8 = smov 1   ;;  %v309_v39 = vlaneseq  ;;  %s2017_s0 = inlined_call_operand.vmem [shape: f32[37,512], index: 0, kind: input, shape index: {}]   ;;  %s2018_s1 = inlined_call_operand.vmem [shape: f32[10,37], index: 1, kind: input, shape index: {}]   ;;  %s2019_s3 = inlined_call_operand.vmem [shape: f32[9,1,512], index: 3, kind: input, shape index: {}]   ;;  %s2020_s2 = inlined_call_operand.vmem [shape: f32[10,144], index: 2, kind: input, shape index: {}]   ;;  %s2021_s4 = inlined_call_operand.vmem [shape: f32[10,512], index: 4, kind: output, shape index: {}]  }
   0x1   :  { %v36_v0 = vld [vmem:[%s2017_s0 + $0x88] sm:$0x1f]  ;;  %v35_v1 = vld [vmem:[%s2017_s0 + $0x80] sm:$0x1f]  ;;  %123 = vmatprep.mubr.f32.mxu0 %v1224_v3  ;;  %225 = vst [vmem:[#allocation2 + $0x20] sm:$0xff] %v1224_v3  ;;  %226 = vst [vmem:[#allocation2 + $0x28] sm:$0xff] %v1224_v3  ;;  %200 = vmatprep.mubr.f32.mxu1 %v1224_v3 }
   0x2   :  { %v32_v2 = vld [vmem:[%s2017_s0 + $0x68] sm:$0xff]  ;;  %227 = vst [vmem:[#allocation2 + $0x30] sm:$0xff] %v1224_v3  ;;  %228 = vst [vmem:[#allocation2 + $0x38] sm:$0xff] %v1224_v3  ;;  %1171 = vmatprep.subr.msk.mxu0 %vm46_vm0, %v36_v0  ;;  %v38_v4 = vld [vmem:[%s2017_s0 + $0x98] sm:$0x1f]  ;;  %s1229_s9 = smov 15  }
   0x3   :  { %233 = vst [vmem:[#allocation2 + $0x60] sm:$0xff] %v1224_v3  ;;  %234 = vst [vmem:[#allocation2 + $0x68] sm:$0xff] %v1224_v3  ;;  %v31_v5 = vld [vmem:[%s2017_s0 + $0x60] sm:$0xff]  ;;  %v37_v6 = vld [vmem:[%s2017_s0 + $0x90] sm:$0x1f]  ;;  %1172 = vmatpush1.msk.msra.mxu0 %vm46_vm0, %v35_v1  ;;  %1175 = vmatprep.subr.msk.mxu1 %vm46_vm0, %v38_v4  ;;  %s1230_s10 = smov 16  }
   0x4   :  { %235 = vst [vmem:[#allocation2 + $0x70] sm:$0xff] %v1224_v3  ;;  %236 = vst [vmem:[#allocation2 + $0x78] sm:$0xff] %v1224_v3  ;;  %v28_v7 = vld [vmem:[%s2017_s0 + $0x48] sm:$0xff]  ;;  %v34_v8 = vld [vmem:[%s2017_s0 + $0x78] sm:$0xff]  ;;  %83 = vmatprep.subr.mxu0 %v32_v2  ;;  %1176 = vmatpush1.msk.msra.mxu1 %vm46_vm0, %v37_v6  ;;  %s1231_s11 = smov 17   ;;  %s1232_s12 = smov 111  }
   0x5   :  { %241 = vst [vmem:[#allocation2 + $0xa0] sm:$0xff] %v1224_v3  ;;  %242 = vst [vmem:[#allocation2 + $0xa8] sm:$0xff] %v1224_v3  ;;  %v27_v9 = vld [vmem:[%s2017_s0 + $0x40] sm:$0xff]  ;;  %v33_v10 = vld [vmem:[%s2017_s0 + $0x70] sm:$0xff]  ;;  %84 = vmatpush1.msra.mxu0 %v31_v5  ;;  %160 = vmatprep.subr.mxu1 %v34_v8  ;;  %vm816_vm2 = vcmp.lt.s32.totalorder %v309_v39, 512  ;;  %v1233_v40 = vmov 1.0  }
   0x6   :  { %243 = vst [vmem:[#allocation2 + $0xb0] sm:$0xff] %v1224_v3  ;;  %244 = vst [vmem:[#allocation2 + $0xb8] sm:$0xff] %v1224_v3  ;;  %v30_v11 = vld [vmem:[%s2017_s0 + $0x58] sm:$0xff]  ;;  %v24_v12 = vld [vmem:[%s2017_s0 + $0x28] sm:$0xff]  ;;  %85 = vmatprep.subr.mxu0 %v28_v7  ;;  %161 = vmatpush1.msra.mxu1 %v33_v10  ;;  %v323_v41 = vshrl.u32 %v309_v39, 7  ;;  %v1501_v42 = vand.u32 127, %v309_v39 }
   0x7   :  { %249 = vst [vmem:[#allocation2 + $0xe0] sm:$0xff] %v1224_v3  ;;  %250 = vst [vmem:[#allocation2 + $0xe8] sm:$0xff] %v1224_v3  ;;  %v29_v13 = vld [vmem:[%s2017_s0 + $0x50] sm:$0xff]  ;;  %v23_v14 = vld [vmem:[%s2017_s0 + $0x20] sm:$0xff]  ;;  %86 = vmatpush1.msra.mxu0 %v27_v9  ;;  %162 = vmatprep.subr.mxu1 %v30_v11  ;;  %vm897_vm4 = vcmask 130048   ;;  %vm1058_vm12 = vcmask 1041408  }
   0x8   :  { %251 = vst [vmem:[#allocation2 + $0xf0] sm:$0xff] %v1224_v3  ;;  %252 = vst [vmem:[#allocation2 + $0xf8] sm:$0xff] %v1224_v3  ;;  %v26_v15 = vld [vmem:[%s2017_s0 + $0x38] sm:$0xff]  ;;  %v20_v16 = vld [vmem:[%s2017_s0 + $0x8] sm:$0xff]  ;;  %87 = vmatprep.subr.mxu0 %v24_v12  ;;  %163 = vmatpush1.msra.mxu1 %v29_v13  ;;  %v1503_v43 = vsub.s32 0, %v323_v41  ;;  %v1510_v45 = vsub.s32 1, %v323_v41 }
   0x9   :  { %257 = vst [vmem:[#allocation2 + $0x120] sm:$0xff] %v1224_v3  ;;  %258 = vst [vmem:[#allocation2 + $0x128] sm:$0xff] %v1224_v3  ;;  %v25_v17 = vld [vmem:[%s2017_s0 + $0x30] sm:$0xff]  ;;  %v19_v18 = vld [vmem:[%s2017_s0] sm:$0xff]  ;;  %88 = vmatpush1.msra.mxu0 %v23_v14  ;;  %164 = vmatprep.subr.mxu1 %v26_v15  ;;  %vm702_vm3 = vcmp.lt.s32.totalorder %v1501_v42, 112  ;;  %v1518_v48 = vsub.s32 2, %v323_v41 }
   0xa   :  { %259 = vst [vmem:[#allocation2 + $0x130] sm:$0xff] %v1224_v3  ;;  %260 = vst [vmem:[#allocation2 + $0x138] sm:$0xff] %v1224_v3  ;;  %v22_v19 = vld [vmem:[%s2017_s0 + $0x18] sm:$0xff]  ;;  %v17_v20 = vld [vmem:[%s2018_s1] sm:$0xff]  ;;  %89 = vmatprep.subr.mxu0 %v20_v16  ;;  %165 = vmatpush1.msra.mxu1 %v25_v17  ;;  %v1520_v49 = vsub.s32 3, %v323_v41  ;;  %vm638_vm5 = vcmp.lt.s32.totalorder %v1501_v42, 113 }
   0xb   :  { %265 = vst [vmem:[#allocation2 + $0x160] sm:$0xff] %v1224_v3  ;;  %266 = vst [vmem:[#allocation2 + $0x168] sm:$0xff] %v1224_v3  ;;  %v21_v21 = vld [vmem:[%s2017_s0 + $0x10] sm:$0xff]  ;;  %90 = vmatpush1.msra.mxu0 %v19_v18  ;;  %166 = vmatprep.subr.mxu1 %v22_v19  ;;  %v18_v22 = vld [vmem:[%s2018_s1 + $0x8] sm:$0x3]  ;;  %s1225_s0 = smov 112  }
   0xc   :  { %267 = vst [vmem:[#allocation2 + $0x170] sm:$0xff] %v1224_v3  ;;  %268 = vst [vmem:[#allocation2 + $0x178] sm:$0xff] %v1224_v3  ;;  %1173 = vmatmul.mubr.msk.f32.vlgmr.msra.gmra.mxu0 %vm39_vm1, %v17_v20  ;;  %167 = vmatpush1.msra.mxu1 %v21_v21  ;;  %s1226_s1 = smov 113   ;;  %v1184_v44 = vld [vmem:[%s2019_s3 + $0x1c] sm:$0xf]  ;;  %v822_v61 = vld [vmem:[%s2020_s2 + $0x8] sm:$0xff] }
   0xd   :  { %273 = vst [vmem:[#allocation2 + $0x1a0] sm:$0xff] %v1224_v3  ;;  %274 = vst [vmem:[#allocation2 + $0x1a8] sm:$0xff] %v1224_v3  ;;  %1177 = vmatmul.mubr.msk.f32.vlgmr.msra.gmra.mxu1 %vm39_vm1, %v17_v20  ;;  %129 = vmatprep.mubr.f32.mxu0 %v1224_v3  ;;  %v1516_v47 = vrot.slane %v1184_v44, %v1503_v43  ;;  %v1525_v51 = vrot.slane %v1184_v44, %v1510_v45  ;;  %v1183_v58 = vld [vmem:[%s2019_s3 + $0x18] sm:$0xf]  ;;  %v1182_v12 = vld [vmem:[%s2019_s3 + $0x14] sm:$0xf] }
   0xe   :  { %275 = vst [vmem:[#allocation2 + $0x1b0] sm:$0xff] %v1224_v3  ;;  %276 = vst [vmem:[#allocation2 + $0x1b8] sm:$0xff] %v1224_v3  ;;  %206 = vmatprep.mubr.f32.mxu1 %v1224_v3  ;;  %v1535_v55 = vrot.slane %v1184_v44, %v1518_v48  ;;  %v1538_v56 = vrot.slane %v1184_v44, %v1520_v49  ;;  %v1574_v5 = vrot.slane %v1183_v58, %v1510_v45 }
   0xf   :  { %281 = vst [vmem:[#allocation2 + $0x1e0] sm:$0xff] %v1224_v3  ;;  %282 = vst [vmem:[#allocation2 + $0x1e8] sm:$0xff] %v1224_v3  ;;  %v1584_v9 = vrot.slane %v1183_v58, %v1518_v48  ;;  %v1587_v10 = vrot.slane %v1183_v58, %v1520_v49  ;;  %vm574_vm6 = vcmp.lt.s32.totalorder %v1501_v42, 127  ;;  %v1609_v20 = vrot.slane %v1182_v12, %v1503_v43 }
  0x10   :  { %283 = vst [vmem:[#allocation2 + $0x1f0] sm:$0xff] %v1224_v3  ;;  %284 = vst [vmem:[#allocation2 + $0x1f8] sm:$0xff] %v1224_v3  ;;  %1174 = vmatmul.mubr.msk.f32.gmra.mxu0 %vm39_vm1, %v18_v22  ;;  %vm502_vm7 = vcmp.lt.s32.totalorder %v1501_v42, 1  ;;  %vm438_vm8 = vcmp.lt.s32.totalorder %v1501_v42, 15  ;;  %vm374_vm9 = vcmp.lt.s32.totalorder %v1501_v42, 16  ;;  %vm311_vm10 = vcmp.lt.s32.totalorder %v1501_v42, 17 }
  0x11   :  { %289 = vst [vmem:[#allocation2 + $0x220] sm:$0xff] %v1224_v3  ;;  %290 = vst [vmem:[#allocation2 + $0x228] sm:$0xff] %v1224_v3  ;;  %1178 = vmatmul.mubr.msk.f32.gmra.mxu1 %vm39_vm1, %v18_v22  ;;  %1186 = vmatprep.mubr.msk.f32.mxu0 %vm897_vm4, %v822_v61  ;;  %v1612_v22 = vrot.slane %v1182_v12, %v1510_v45  ;;  %vm766_vm11 = vcmp.lt.s32.totalorder %v1501_v42, 111 }
  0x12   :  { %291 = vst [vmem:[#allocation2 + $0x230] sm:$0xff] %v1224_v3  ;;  %292 = vst [vmem:[#allocation2 + $0x238] sm:$0xff] %v1224_v3  ;;  %1188 = vmatprep.mubr.msk.f32.mxu1 %vm897_vm4, %v822_v61  ;;  %v1569_v3 = vrot.slane %v1183_v58, %v1503_v43  ;;  %v1180_v61 = vld [vmem:[%s2019_s3 + $0x8] sm:$0xf] }
  0x13   :  { %819 = vst.msk [vmem:[#allocation2 + $0x22] ss:$8 sm:$0xf] %vm816_vm2, %v1233_v40 }
  0xcc   :  { %v125_v23 = vpop.f32.mrf.mxu0 }
  0xcd   :  { %v1369_v24 = vmax.f32 %v125_v23, 0.0  ;;  %v202_v25 = vpop.f32.mrf.mxu1 }
  0xce   :  { %v127_v26 = vpop.f32.mrf.mxu0  ;;  %v1371_v27 = vmax.f32 %v202_v25, 0.0 }
  0xcf   :  { %2025 = vst [vmem:[#allocation3_spill] sm:$0xff] %v1369_v24  ;;  %v1373_v28 = vmax.f32 %v127_v26, 0.0  ;;  %686 = vrot.lane.b32.xlu0 %v1369_v24, %s1225_s0  ;;  %v204_v29 = vpop.f32.mrf.mxu1 }
  0xd0   :  { %v1377_v30 = vmax.f32 %v204_v29, 0.0  ;;  %v131_v31 = vpop.f32.mrf.mxu0  ;;  %v1620_v29 = vrot.slane %v1182_v12, %v1518_v48 }
  0xd1   :  { %2026 = vst [vmem:[#allocation4_spill] sm:$0xff] %v1373_v28  ;;  %690 = vrot.lane.b32.xlu1 %v1373_v28, %s1225_s0  ;;  %v1381_v32 = vmax.f32 %v131_v31, 0.0  ;;  %v208_v33 = vpop.f32.mrf.mxu1  ;;  %v1623_v31 = vrot.slane %v1182_v12, %v1520_v49  ;;  %v1681_v12 = vrot.slane %v1180_v61, %v1510_v45 }
  0xd2   :  { %v1383_v34 = vmax.f32 %v208_v33, 0.0  ;;  %v133_v35 = vpop.f32.mrf.mxu0  ;;  %v1181_v33 = vld [vmem:[%s2019_s3 + $0xc] sm:$0xf] }
  0xd3   :  { %694 = vrot.lane.b32.xlu0 %v1371_v27, %s1225_s0  ;;  %554 = vst [vmem:[#allocation2 + $0x120] sm:$0x3] %v1381_v32  ;;  %v1388_v36 = vmax.f32 %v133_v35, 0.0  ;;  %v210_v37 = vpop.f32.mrf.mxu1  ;;  %v1645_v41 = vrot.slane %v1181_v33, %v1510_v45  ;;  %v1659_v58 = vrot.slane %v1181_v33, %v1520_v49 }
  0xd4   :  { %556 = vst [vmem:[#allocation2 + $0x130] sm:$0x3] %v1383_v34  ;;  %v1391_v38 = vmax.f32 %v210_v37, 0.0 }
  0xd5   :  { %698 = vrot.lane.b32.xlu1 %v1377_v30, %s1225_s0  ;;  %555 = vst [vmem:[#allocation2 + $0x128] sm:$0x3] %v1388_v36 }
  0xd6   :  { %557 = vst [vmem:[#allocation2 + $0x138] sm:$0x3] %v1391_v38 }
  0xd7   :  { %622 = vrot.lane.b32.xlu0 %v1369_v24, %s1226_s1 }
  0xd9   :  { %626 = vrot.lane.b32.xlu1 %v1373_v28, %s1226_s1 }
  0xdb   :  { %630 = vrot.lane.b32.xlu0 %v1371_v27, %s1226_s1 }
  0xdd   :  { %634 = vrot.lane.b32.xlu1 %v1377_v30, %s1226_s1 }
  0xdf   :  { %558 = vrot.lane.b32.xlu0 %v1369_v24, %s1227_s7 }
  0xe1   :  { %562 = vrot.lane.b32.xlu1 %v1373_v28, %s1227_s7 }
  0xe3   :  { %566 = vrot.lane.b32.xlu0 %v1371_v27, %s1227_s7 }
  0xe5   :  { %570 = vrot.lane.b32.xlu1 %v1377_v30, %s1227_s7 }
  0xe7   :  { %486 = vrot.lane.b32.xlu0 %v1369_v24, %s1228_s8 }
  0xe9   :  { %490 = vrot.lane.b32.xlu1 %v1373_v28, %s1228_s8 }
  0xeb   :  { %494 = vrot.lane.b32.xlu0 %v1371_v27, %s1228_s8 }
  0xed   :  { %498 = vrot.lane.b32.xlu1 %v1377_v30, %s1228_s8 }
  0xef   :  { %422 = vrot.lane.b32.xlu0 %v1369_v24, %s1229_s9 }
  0xf1   :  { %426 = vrot.lane.b32.xlu1 %v1373_v28, %s1229_s9 }
  0xf3   :  { %430 = vrot.lane.b32.xlu0 %v1371_v27, %s1229_s9 }
  0xf5   :  { %434 = vrot.lane.b32.xlu1 %v1377_v30, %s1229_s9 }
  0xf7   :  { %358 = vrot.lane.b32.xlu0 %v1369_v24, %s1230_s10 }
  0xf9   :  { %362 = vrot.lane.b32.xlu1 %v1373_v28, %s1230_s10 }
  0xfb   :  { %688 = vrot.lane.b32.xlu0 %v1381_v32, %s1225_s0 }
  0xfd   :  { %696 = vrot.lane.b32.xlu1 %v1383_v34, %s1225_s0 }
  0xff   :  { %624 = vrot.lane.b32.xlu0 %v1381_v32, %s1226_s1 }
 0x101   :  { %370 = vrot.lane.b32.xlu1 %v1377_v30, %s1230_s10 }
 0x103   :  { %632 = vrot.lane.b32.xlu0 %v1383_v34, %s1226_s1 }
 0x105   :  { %297 = vrot.lane.b32.xlu1 %v1373_v28, %s1231_s11 }
 0x107   :  { %560 = vrot.lane.b32.xlu0 %v1381_v32, %s1227_s7 }
 0x109   :  { %305 = vrot.lane.b32.xlu1 %v1377_v30, %s1231_s11 }
 0x10b   :  { %568 = vrot.lane.b32.xlu0 %v1383_v34, %s1227_s7 }
 0x10d   :  { %754 = vrot.lane.b32.xlu1 %v1373_v28, %s1232_s12 }
 0x10f   :  { %488 = vrot.lane.b32.xlu0 %v1381_v32, %s1228_s8 }
 0x111   :  { %700 = vrot.lane.b32.xlu1 %v1391_v38, %s1225_s0 }
 0x113   :  { %496 = vrot.lane.b32.xlu0 %v1383_v34, %s1228_s8 }
 0x115   :  { %628 = vrot.lane.b32.xlu1 %v1388_v36, %s1226_s1 }
 0x117   :  { %424 = vrot.lane.b32.xlu0 %v1381_v32, %s1229_s9 }
 0x119   :  { %636 = vrot.lane.b32.xlu1 %v1391_v38, %s1226_s1 }
 0x11b   :  { %432 = vrot.lane.b32.xlu0 %v1383_v34, %s1229_s9 }
 0x11d   :  { %564 = vrot.lane.b32.xlu1 %v1388_v36, %s1227_s7 }
 0x11f   :  { %360 = vrot.lane.b32.xlu0 %v1381_v32, %s1230_s10 }
 0x121   :  { %572 = vrot.lane.b32.xlu1 %v1391_v38, %s1227_s7 }
 0x123   :  { %368 = vrot.lane.b32.xlu0 %v1383_v34, %s1230_s10 }
 0x125   :  { %492 = vrot.lane.b32.xlu1 %v1388_v36, %s1228_s8 }
 0x127   :  { %692 = vrot.lane.b32.xlu0 %v1388_v36, %s1225_s0 }
 0x129   :  { %500 = vrot.lane.b32.xlu1 %v1391_v38, %s1228_s8 }
 0x12b   :  { %366 = vrot.lane.b32.xlu0 %v1371_v27, %s1230_s10 }
 0x12d   :  { %428 = vrot.lane.b32.xlu1 %v1388_v36, %s1229_s9 }
 0x12f   :  { %295 = vrot.lane.b32.xlu0 %v1381_v32, %s1231_s11 }
 0x131   :  { %436 = vrot.lane.b32.xlu1 %v1391_v38, %s1229_s9 }
 0x133   :  { %303 = vrot.lane.b32.xlu0 %v1383_v34, %s1231_s11 }
 0x135   :  { %364 = vrot.lane.b32.xlu1 %v1388_v36, %s1230_s10 }
 0x137   :  { %293 = vrot.lane.b32.xlu0 %v1369_v24, %s1231_s11 }
 0x139   :  { %372 = vrot.lane.b32.xlu1 %v1391_v38, %s1230_s10 }
 0x13b   :  { %301 = vrot.lane.b32.xlu0 %v1371_v27, %s1231_s11 }
 0x13d   :  { %299 = vrot.lane.b32.xlu1 %v1388_v36, %s1231_s11 }
 0x13f   :  { %752 = vrot.lane.b32.xlu0 %v1381_v32, %s1232_s12 }
 0x141   :  { %v687_v46 = vpop.permute.xlu0 %686  ;;  %307 = vrot.lane.b32.xlu1 %v1391_v38, %s1231_s11 }
 0x143   :  { %v691_v50 = vpop.permute.xlu1 %690  ;;  %760 = vrot.lane.b32.xlu0 %v1383_v34, %s1232_s12 }
 0x144   :  { %v707_v52 = vsel %vm702_vm3, %v687_v46, %v691_v50 }
 0x145   :  { %v1530_v53 = vmul.f32 %v1516_v47, %v707_v52  ;;  %v695_v54 = vpop.permute.xlu0 %694  ;;  %756 = vrot.lane.b32.xlu1 %v1388_v36, %s1232_s12 }
 0x146   :  { %v705_v57 = vsel %vm702_vm3, %v691_v50, %v695_v54 }
 0x147   :  { %v1546_v59 = vmul.f32 %v1525_v51, %v705_v57  ;;  %v699_v60 = vpop.permute.xlu1 %698  ;;  %750 = vrot.lane.b32.xlu0 %v1369_v24, %s1232_s12  ;;  %v1656_v57 = vrot.slane %v1181_v33, %v1503_v43 }
 0x148   :  { %v703_v62 = vsel %vm702_vm3, %v695_v54, %v699_v60  ;;  %v709_v63 = vsel %vm702_vm3, %v699_v60, %v687_v46  ;;  %v1648_v46 = vrot.slane %v1181_v33, %v1518_v48  ;;  %v1702_v33 = vld [vmem:[%s2019_s3 + $0x4] sm:$0xf] }
 0x149   :  { %v1560_v0 = vmul.f32 %v1535_v55, %v703_v62  ;;  %v1563_v1 = vmul.f32 %v1538_v56, %v709_v63  ;;  %v623_v2 = vpop.permute.xlu0 %622  ;;  %764 = vrot.lane.b32.xlu1 %v1391_v38, %s1232_s12 }
 0x14b   :  { %v627_v4 = vpop.permute.xlu1 %626  ;;  %758 = vrot.lane.b32.xlu0 %v1371_v27, %s1232_s12 }
 0x14c   :  { %v643_v6 = vsel %vm638_vm5, %v623_v2, %v627_v4 }
 0x14d   :  { %v1579_v7 = vmul.f32 %v1569_v3, %v643_v6  ;;  %v631_v8 = vpop.permute.xlu0 %630  ;;  %762 = vrot.lane.b32.xlu1 %v1377_v30, %s1232_s12 }
 0x14e   :  { %v641_v11 = vsel %vm638_vm5, %v627_v4, %v631_v8 }
 0x14f   :  { %v1595_v13 = vmul.f32 %v1574_v5, %v641_v11  ;;  %v635_v14 = vpop.permute.xlu1 %634 }
 0x150   :  { %v639_v15 = vsel %vm638_vm5, %v631_v8, %v635_v14  ;;  %v645_v16 = vsel %vm638_vm5, %v635_v14, %v623_v2 }
 0x151   :  { %v1602_v17 = vmul.f32 %v1584_v9, %v639_v15  ;;  %v1605_v18 = vmul.f32 %v1587_v10, %v645_v16  ;;  %v559_v19 = vpop.permute.xlu0 %558  ;;  %v1684_v15 = vrot.slane %v1180_v61, %v1518_v48 }
 0x153   :  { %v563_v21 = vpop.permute.xlu1 %562 }
 0x154   :  { %v579_v23 = vsel %vm574_vm6, %v559_v19, %v563_v21 }
 0x155   :  { %v1617_v25 = vmul.f32 %v1609_v20, %v579_v23  ;;  %v567_v26 = vpop.permute.xlu0 %566  ;;  %v1692_v23 = vrot.slane %v1180_v61, %v1503_v43 }
 0x156   :  { %v577_v32 = vsel %vm574_vm6, %v563_v21, %v567_v26 }
 0x157   :  { %2027 = vst [vmem:[#allocation5_spill] sm:$0xff] %v1617_v25  ;;  %v1631_v34 = vmul.f32 %v1612_v22, %v577_v32  ;;  %v571_v35 = vpop.permute.xlu1 %570 }
 0x158   :  { %v575_v36 = vsel %vm574_vm6, %v567_v26, %v571_v35  ;;  %v581_v37 = vsel %vm574_vm6, %v571_v35, %v559_v19  ;;  %v1695_v26 = vrot.slane %v1180_v61, %v1520_v49 }
 0x159   :  { %2028 = vst [vmem:[#allocation6_spill] sm:$0xff] %v1631_v34  ;;  %v1638_v38 = vmul.f32 %v1620_v29, %v575_v36  ;;  %v1641_v39 = vmul.f32 %v1623_v31, %v581_v37  ;;  %v487_v40 = vpop.permute.xlu0 %486 }
 0x15b   :  { %v491_v44 = vpop.permute.xlu1 %490 }
 0x15c   :  { %v507_v50 = vsel %vm502_vm7, %v487_v40, %v491_v44 }
 0x15d   :  { %v1653_v52 = vmul.f32 %v1645_v41, %v507_v50  ;;  %v495_v54 = vpop.permute.xlu0 %494 }
 0x15e   :  { %v505_v60 = vsel %vm502_vm7, %v491_v44, %v495_v54 }
 0x15f   :  { %2029 = vst [vmem:[#allocation7_spill] sm:$0xff] %v1653_v52  ;;  %v1667_v62 = vmul.f32 %v1648_v46, %v505_v60  ;;  %v499_v63 = vpop.permute.xlu1 %498  ;;  %v1720_v60 = vrot.slane %v1702_v33, %v1510_v45 }
 0x160   :  { %v503_v2 = vsel %vm502_vm7, %v495_v54, %v499_v63  ;;  %v509_v4 = vsel %vm502_vm7, %v499_v63, %v487_v40 }
 0x161   :  { %v1674_v6 = vmul.f32 %v1656_v57, %v509_v4  ;;  %v1677_v8 = vmul.f32 %v1659_v58, %v503_v2  ;;  %v423_v11 = vpop.permute.xlu0 %422 }
 0x163   :  { %2030 = vst [vmem:[#allocation8_spill] sm:$0xff] %v1674_v6  ;;  %v427_v14 = vpop.permute.xlu1 %426 }
 0x164   :  { %v443_v16 = vsel %vm438_vm8, %v423_v11, %v427_v14 }
 0x165   :  { %v1689_v19 = vmul.f32 %v1681_v12, %v443_v16  ;;  %v431_v21 = vpop.permute.xlu0 %430  ;;  %v1736_v16 = vrot.slane %v1702_v33, %v1503_v43 }
 0x166   :  { %v441_v32 = vsel %vm438_vm8, %v427_v14, %v431_v21 }
 0x167   :  { %2031 = vst [vmem:[#allocation9_spill] sm:$0xff] %v1689_v19  ;;  %v1705_v35 = vmul.f32 %v1684_v15, %v441_v32  ;;  %v435_v36 = vpop.permute.xlu1 %434 }
 0x168   :  { %v439_v37 = vsel %vm438_vm8, %v431_v21, %v435_v36  ;;  %v445_v40 = vsel %vm438_vm8, %v435_v36, %v423_v11 }
 0x169   :  { %2032 = vst [vmem:[#allocation10_spill] sm:$0xff] %v1705_v35  ;;  %v1712_v44 = vmul.f32 %v1692_v23, %v445_v40  ;;  %v1715_v50 = vmul.f32 %v1695_v26, %v439_v37  ;;  %v359_v54 = vpop.permute.xlu0 %358 }
 0x16b   :  { %2033 = vst [vmem:[#allocation11_spill] sm:$0xff] %v1712_v44  ;;  %2034 = vst [vmem:[#allocation12_spill] sm:$0xff] %v1715_v50  ;;  %v1722_v61 = vpop.permute.xlu1 %362 }
 0x16c   :  { %v379_v63 = vsel %vm374_vm9, %v359_v54, %v1722_v61 }
 0x16d   :  { %v1728_v2 = vmul.f32 %v1720_v60, %v379_v63  ;;  %v1730_v4 = vpop.permute.xlu0 %688 }
 0x16f   :  { %2035 = vst [vmem:[#allocation13_spill] sm:$0xff] %v1728_v2  ;;  %v1732_v11 = vpop.permute.xlu1 %696 }
 0x171   :  { %v625_v14 = vpop.permute.xlu0 %624 }
 0x173   :  { %v1738_v21 = vpop.permute.xlu1 %370 }
 0x174   :  { %v381_v32 = vsel %vm374_vm9, %v1738_v21, %v359_v54 }
 0x175   :  { %v1744_v36 = vmul.f32 %v1736_v16, %v381_v32  ;;  %v633_v37 = vpop.permute.xlu0 %632 }
 0x177   :  { %2036 = vst [vmem:[#allocation14_spill] sm:$0xff] %v1744_v36  ;;  %v1746_v40 = vpop.permute.xlu1 %297 }
 0x179   :  { %v561_v63 = vpop.permute.xlu0 %560 }
 0x17b   :  { %v1748_v2 = vpop.permute.xlu1 %305 }
 0x17d   :  { %v569_v44 = vpop.permute.xlu0 %568 }
 0x17f   :  { %v1750_v19 = vpop.permute.xlu1 %754 }
 0x180   :  { %2037 = vst [vmem:[#allocation15_spill] sm:$0xff] %v1750_v19 }
 0x181   :  { %v1752_v6 = vpop.permute.xlu0 %488 }
 0x183   :  { %v701_v52 = vpop.permute.xlu1 %700 }
 0x184   :  { %v704_v24 = vsel %vm702_vm3, %v1732_v11, %v701_v52  ;;  %v710_v54 = vsel %vm702_vm3, %v701_v52, %v1730_v4 }
 0x185   :  { %v740_v32 = vmul.f32 %v1535_v55, %v704_v24  ;;  %v741_v36 = vmul.f32 %v1538_v56, %v710_v54  ;;  %v1762_v28 = vpop.permute.xlu0 %496 }
 0x187   :  { %748 = vst [vmem:[#allocation2 + $0x1f0] sm:$0x3] %v740_v32  ;;  %749 = vst [vmem:[#allocation2 + $0x1f8] sm:$0x3] %v741_v36  ;;  %v629_v19 = vpop.permute.xlu1 %628 }
 0x188   :  { %v642_v35 = vsel %vm638_vm5, %v629_v19, %v633_v37  ;;  %v644_v50 = vsel %vm638_vm5, %v625_v14, %v629_v19 }
 0x189   :  { %v674_v25 = vmul.f32 %v1569_v3, %v644_v50  ;;  %v675_v34 = vmul.f32 %v1574_v5, %v642_v35  ;;  %v1770_v52 = vpop.permute.xlu0 %424 }
 0x18b   :  { %682 = vst [vmem:[#allocation2 + $0x1a0] sm:$0x3] %v674_v25  ;;  %683 = vst [vmem:[#allocation2 + $0x1a8] sm:$0x3] %v675_v34  ;;  %v637_v24 = vpop.permute.xlu1 %636 }
 0x18c   :  { %v640_v55 = vsel %vm638_vm5, %v633_v37, %v637_v24  ;;  %v646_v56 = vsel %vm638_vm5, %v637_v24, %v625_v14 }
 0x18d   :  { %v676_v36 = vmul.f32 %v1584_v9, %v640_v55  ;;  %v677_v54 = vmul.f32 %v1587_v10, %v646_v56  ;;  %v1778_v19 = vpop.permute.xlu0 %432 }
 0x18e   :  { %v888_v3 = vld [vmem:[#allocation2 + $0x1f8] sm:$0xff]  ;;  %v887_v50 = vld [vmem:[#allocation2 + $0x1f0] sm:$0xff] }
 0x18f   :  { %684 = vst [vmem:[#allocation2 + $0x1b0] sm:$0x3] %v676_v36  ;;  %685 = vst [vmem:[#allocation2 + $0x1b8] sm:$0x3] %v677_v54  ;;  %981 = vmatprep.subr.mxu1 %v888_v3  ;;  %v565_v5 = vpop.permute.xlu1 %564 }
 0x190   :  { %v578_v25 = vsel %vm574_vm6, %v565_v5, %v569_v44  ;;  %v580_v34 = vsel %vm574_vm6, %v561_v63, %v565_v5  ;;  %982 = vmatpush1.msra.mxu1 %v887_v50  ;;  %v1820_v50 = vrot.slane %v1702_v33, %v1520_v49 }
 0x191   :  { %v610_v35 = vmul.f32 %v1609_v20, %v580_v34  ;;  %v611_v9 = vmul.f32 %v1612_v22, %v578_v25  ;;  %983 = vmatprep.subr.mxu1 %v1563_v1  ;;  %v1787_v10 = vpop.permute.xlu0 %360 }
 0x192   :  { %984 = vmatpush1.msra.mxu1 %v1560_v0 }
 0x193   :  { %618 = vst [vmem:[#allocation2 + $0x160] sm:$0x3] %v610_v35  ;;  %619 = vst [vmem:[#allocation2 + $0x168] sm:$0x3] %v611_v9  ;;  %v573_v14 = vpop.permute.xlu1 %572 }
 0x194   :  { %v576_v37 = vsel %vm574_vm6, %v569_v44, %v573_v14  ;;  %v582_v32 = vsel %vm574_vm6, %v573_v14, %v561_v63  ;;  %v864_v14 = vld [vmem:[#allocation2 + $0x138] sm:$0xff] }
 0x195   :  { %v612_v24 = vmul.f32 %v1620_v29, %v576_v37  ;;  %v613_v20 = vmul.f32 %v1623_v31, %v582_v32  ;;  %v1796_v22 = vpop.permute.xlu0 %368  ;;  %v863_v32 = vld [vmem:[#allocation2 + $0x130] sm:$0xff] }
 0x196   :  { %v880_v1 = vld [vmem:[#allocation2 + $0x1b8] sm:$0xff]  ;;  %v879_v55 = vld [vmem:[#allocation2 + $0x1b0] sm:$0xff] }
 0x197   :  { %620 = vst [vmem:[#allocation2 + $0x170] sm:$0x3] %v612_v24  ;;  %621 = vst [vmem:[#allocation2 + $0x178] sm:$0x3] %v613_v20  ;;  %985 = vmatprep.subr.mxu1 %v880_v1  ;;  %v493_v0 = vpop.permute.xlu1 %492 }
 0x198   :  { %v506_v56 = vsel %vm502_vm7, %v493_v0, %v1762_v28  ;;  %v508_v44 = vsel %vm502_vm7, %v1752_v6, %v493_v0  ;;  %986 = vmatpush1.msra.mxu1 %v879_v55 }
 0x199   :  { %v539_v29 = vmul.f32 %v1645_v41, %v508_v44  ;;  %v540_v31 = vmul.f32 %v1648_v46, %v506_v56  ;;  %987 = vmatprep.subr.mxu1 %v1605_v18  ;;  %v693_v63 = vpop.permute.xlu0 %692  ;;  %v397_v18 = vrot.slane %v1702_v33, %v1518_v48 }
 0x19a   :  { %v706_v36 = vsel %vm702_vm3, %v693_v63, %v1732_v11  ;;  %v708_v54 = vsel %vm702_vm3, %v1730_v4, %v693_v63  ;;  %988 = vmatpush1.msra.mxu1 %v1602_v17 }
 0x19b   :  { %547 = vst [vmem:[#allocation2 + $0xe8] sm:$0x3] %v539_v29  ;;  %548 = vst [vmem:[#allocation2 + $0xf0] sm:$0x3] %v540_v31  ;;  %v738_v3 = vmul.f32 %v1516_v47, %v708_v54  ;;  %v739_v41 = vmul.f32 %v1525_v51, %v706_v36  ;;  %v501_v46 = vpop.permute.xlu1 %500  ;;  %v877_v31 = vld [vmem:[#allocation2 + $0x1a0] sm:$0xff] }
 0x19c   :  { %v504_v4 = vsel %vm502_vm7, %v1762_v28, %v501_v46  ;;  %v510_v17 = vsel %vm502_vm7, %v501_v46, %v1752_v6  ;;  %v870_v46 = vld [vmem:[#allocation2 + $0x168] sm:$0xff] }
 0x19d   :  { %746 = vst [vmem:[#allocation2 + $0x1e0] sm:$0x3] %v738_v3  ;;  %747 = vst [vmem:[#allocation2 + $0x1e8] sm:$0x3] %v739_v41  ;;  %v538_v47 = vmul.f32 %v1656_v57, %v510_v17  ;;  %v541_v51 = vmul.f32 %v1659_v58, %v504_v4  ;;  %v367_v11 = vpop.permute.xlu0 %366  ;;  %v869_v17 = vld [vmem:[#allocation2 + $0x160] sm:$0xff] }
 0x19e   :  { %v375_v33 = vsel %vm374_vm9, %v367_v11, %v1738_v21  ;;  %v377_v5 = vsel %vm374_vm9, %v1722_v61, %v367_v11  ;;  %v872_v28 = vld [vmem:[#allocation2 + $0x178] sm:$0xff]  ;;  %v871_v25 = vld [vmem:[#allocation2 + $0x170] sm:$0xff] }
 0x19f   :  { %546 = vst [vmem:[#allocation2 + $0xe0] sm:$0x3] %v538_v47  ;;  %549 = vst [vmem:[#allocation2 + $0xf8] sm:$0x3] %v541_v51  ;;  %v1836_v6 = vmul.f32 %v397_v18, %v377_v5  ;;  %v1839_v34 = vmul.f32 %v1820_v50, %v375_v33  ;;  %989 = vmatprep.subr.mxu1 %v872_v28  ;;  %v429_v57 = vpop.permute.xlu1 %428  ;;  %v2038_v51 = vld [vmem:[#allocation6_spill] sm:$0xff]  ;;  %v2039_v33 = vld [vmem:[#allocation5_spill] sm:$0xff] }
 0x1a0   :  { %v442_v58 = vsel %vm438_vm8, %v429_v57, %v1778_v19  ;;  %v444_v21 = vsel %vm438_vm8, %v1770_v52, %v429_v57  ;;  %990 = vmatpush1.msra.mxu1 %v871_v25  ;;  %v862_v5 = vld [vmem:[#allocation2 + $0x128] sm:$0xff] }
 0x1a1   :  { %v475_v61 = vmul.f32 %v1681_v12, %v444_v21  ;;  %v476_v35 = vmul.f32 %v1684_v15, %v442_v58  ;;  %991 = vmatprep.subr.mxu1 %v1641_v39  ;;  %v1850_v9 = vpop.permute.xlu0 %295  ;;  %v2040_v57 = vld [vmem:[#allocation12_spill] sm:$0xff]  ;;  %v861_v21 = vld [vmem:[#allocation2 + $0x120] sm:$0xff] }
 0x1a2   :  { %992 = vmatpush1.msra.mxu1 %v1638_v38  ;;  %v320_v38 = vld [vmem:[%s2019_s3] sm:$0xf]  ;;  %v855_v0 = vld [vmem:[#allocation2 + $0xf0] sm:$0xff] }
 0x1a3   :  { %483 = vst [vmem:[#allocation2 + $0xa8] sm:$0x3] %v475_v61  ;;  %484 = vst [vmem:[#allocation2 + $0xb0] sm:$0x3] %v476_v35  ;;  %993 = vmatprep.subr.mxu1 %v864_v14  ;;  %v437_v37 = vpop.permute.xlu1 %436  ;;  %v333_v54 = vrot.slane %v320_v38, %v1518_v48  ;;  %v337_v3 = vrot.slane %v320_v38, %v1520_v49  ;;  %v2041_v61 = vld [vmem:[#allocation10_spill] sm:$0xff] }
 0x1a4   :  { %v440_v24 = vsel %vm438_vm8, %v1778_v19, %v437_v37  ;;  %v446_v12 = vsel %vm438_vm8, %v437_v37, %v1770_v52  ;;  %994 = vmatpush1.msra.mxu1 %v863_v32  ;;  %v886_v39 = vld [vmem:[#allocation2 + $0x1e8] sm:$0xff]  ;;  %v885_v15 = vld [vmem:[#allocation2 + $0x1e0] sm:$0xff] }
 0x1a5   :  { %v474_v20 = vmul.f32 %v1692_v23, %v446_v12  ;;  %v477_v1 = vmul.f32 %v1695_v26, %v440_v24  ;;  %904 = vmatprep.subr.mxu0 %v886_v39  ;;  %995 = vmatprep.subr.mxu1 %v1377_v30  ;;  %v1865_v55 = vpop.permute.xlu0 %303  ;;  %v1871_v23 = vrot.slane %v320_v38, %v1503_v43  ;;  %v1185_v35 = vld [vmem:[%s2019_s3 + $0x20] sm:$0xf]  ;;  %v2042_v37 = vld [vmem:[#allocation4_spill] sm:$0xff] }
 0x1a6   :  { %905 = vmatpush1.msra.mxu0 %v885_v15  ;;  %996 = vmatpush1.msra.mxu1 %v1371_v27  ;;  %v856_v52 = vld [vmem:[#allocation2 + $0xf8] sm:$0xff]  ;;  %v329_v30 = vrot.slane %v320_v38, %v1510_v45  ;;  %v2043_v12 = vld [vmem:[#allocation3_spill] sm:$0xff]  ;;  %v854_v39 = vld [vmem:[#allocation2 + $0xe8] sm:$0xff] }
 0x1a7   :  { %482 = vst [vmem:[#allocation2 + $0xa0] sm:$0x3] %v474_v20  ;;  %485 = vst [vmem:[#allocation2 + $0xb8] sm:$0x3] %v477_v1  ;;  %997 = vmatprep.subr.mxu1 %v856_v52  ;;  %v365_v19 = vpop.permute.xlu1 %364  ;;  %906 = vmatprep.subr.mxu0 %v1546_v59  ;;  %v878_v59 = vld [vmem:[#allocation2 + $0x1a8] sm:$0xff]  ;;  %v853_v1 = vld [vmem:[#allocation2 + $0xe0] sm:$0xff]  ;;  %v781_v52 = vrot.slane %v1185_v35, %v1503_v43 }
 0x1a8   :  { %v378_v26 = vsel %vm374_vm9, %v365_v19, %v1796_v22  ;;  %v380_v27 = vsel %vm374_vm9, %v1787_v10, %v365_v19  ;;  %907 = vmatpush1.msra.mxu0 %v1530_v53  ;;  %998 = vmatpush1.msra.mxu1 %v855_v0  ;;  %v785_v19 = vrot.slane %v1185_v35, %v1510_v45  ;;  %v2044_v0 = vld [vmem:[#allocation7_spill] sm:$0xff] }
 0x1a9   :  { %v411_v56 = vmul.f32 %v1720_v60, %v380_v27  ;;  %v412_v44 = vmul.f32 %v397_v18, %v378_v26  ;;  %908 = vmatprep.subr.mxu0 %v878_v59  ;;  %999 = vmatprep.subr.mxu1 %v1677_v8  ;;  %v294_v29 = vpop.permute.xlu0 %293  ;;  %v2045_v27 = vld [vmem:[#allocation8_spill] sm:$0xff]  ;;  %v789_v45 = vrot.slane %v1185_v35, %v1518_v48 }
 0x1aa   :  { %v316_v63 = vsel %vm311_vm10, %v294_v29, %v1746_v40  ;;  %v318_v36 = vsel %vm311_vm10, %v1748_v2, %v294_v29  ;;  %909 = vmatpush1.msra.mxu0 %v877_v31  ;;  %1000 = vmatpush1.msra.mxu1 %v1667_v62  ;;  %v847_v11 = vld [vmem:[#allocation2 + $0xb0] sm:$0xff]  ;;  %v846_v43 = vld [vmem:[#allocation2 + $0xa8] sm:$0xff]  ;;  %v793_v31 = vrot.slane %v1185_v35, %v1520_v49  ;;  %v2048_v49 = vld [vmem:[#allocation11_spill] sm:$0xff] }
 0x1ab   :  { %419 = vst [vmem:[#allocation2 + $0x68] sm:$0x3] %v411_v56  ;;  %420 = vst [vmem:[#allocation2 + $0x70] sm:$0x3] %v412_v44  ;;  %v1891_v53 = vmul.f32 %v1871_v23, %v318_v36  ;;  %v1893_v60 = vmul.f32 %v329_v30, %v316_v63  ;;  %v373_v8 = vpop.permute.xlu1 %372  ;;  %910 = vmatprep.subr.mxu0 %v1595_v13  ;;  %v2046_v63 = vld [vmem:[#allocation15_spill] sm:$0xff] }
 0x1ac   :  { %v376_v41 = vsel %vm374_vm9, %v1796_v22, %v373_v8  ;;  %v382_v62 = vsel %vm374_vm9, %v373_v8, %v1787_v10  ;;  %911 = vmatpush1.msra.mxu0 %v1579_v7 }
 0x1ad   :  { %v410_v18 = vmul.f32 %v1736_v16, %v382_v62  ;;  %v413_v4 = vmul.f32 %v1820_v50, %v376_v41  ;;  %912 = vmatprep.subr.mxu0 %v870_v46  ;;  %v302_v13 = vpop.permute.xlu0 %301 }
 0x1ae   :  { %v312_v47 = vsel %vm311_vm10, %v302_v13, %v1748_v2  ;;  %v314_v22 = vsel %vm311_vm10, %v1746_v40, %v302_v13  ;;  %913 = vmatpush1.msra.mxu0 %v869_v17  ;;  %v848_v10 = vld [vmem:[#allocation2 + $0xb8] sm:$0xff]  ;;  %v845_v29 = vld [vmem:[#allocation2 + $0xa0] sm:$0xff] }
 0x1af   :  { %418 = vst [vmem:[#allocation2 + $0x60] sm:$0x3] %v410_v18  ;;  %421 = vst [vmem:[#allocation2 + $0x78] sm:$0x3] %v413_v4  ;;  %v1913_v7 = vmul.f32 %v333_v54, %v314_v22  ;;  %v1915_v16 = vmul.f32 %v337_v3, %v312_v47  ;;  %1001 = vmatprep.subr.mxu1 %v848_v10  ;;  %v300_v50 = vpop.permute.xlu1 %299  ;;  %914 = vmatprep.subr.mxu0 %v2038_v51  ;;  %v2049_v22 = vld [vmem:[#allocation13_spill] sm:$0xff] }
 0x1b0   :  { %v315_v2 = vsel %vm311_vm10, %v300_v50, %v1865_v55  ;;  %v317_v40 = vsel %vm311_vm10, %v1850_v9, %v300_v50  ;;  %915 = vmatpush1.msra.mxu0 %v2039_v33  ;;  %1002 = vmatpush1.msra.mxu1 %v847_v11  ;;  %v2050_v11 = vld [vmem:[#allocation14_spill] sm:$0xff] }
 0x1b1   :  { %v347_v28 = vmul.f32 %v329_v30, %v317_v40  ;;  %v348_v25 = vmul.f32 %v333_v54, %v315_v2  ;;  %1003 = vmatprep.subr.mxu1 %v2040_v57  ;;  %v753_v58 = vpop.permute.xlu0 %752  ;;  %916 = vmatprep.subr.mxu0 %v862_v5  ;;  %v2047_v54 = vld [vmem:[#allocation9_spill] sm:$0xff] }
 0x1b2   :  { %917 = vmatpush1.msra.mxu0 %v861_v21  ;;  %1004 = vmatpush1.msra.mxu1 %v2041_v61  ;;  %v839_v30 = vld [vmem:[#allocation2 + $0x70] sm:$0xff]  ;;  %v838_v41 = vld [vmem:[#allocation2 + $0x68] sm:$0xff] }
 0x1b3   :  { %355 = vst [vmem:[#allocation2 + $0x28] sm:$0x3] %v347_v28  ;;  %356 = vst [vmem:[#allocation2 + $0x30] sm:$0x3] %v348_v25  ;;  %v308_v14 = vpop.permute.xlu1 %307  ;;  %918 = vmatprep.subr.mxu0 %v2042_v37 }
 0x1b4   :  { %v313_v32 = vsel %vm311_vm10, %v1865_v55, %v308_v14  ;;  %v319_v24 = vsel %vm311_vm10, %v308_v14, %v1850_v9  ;;  %919 = vmatpush1.msra.mxu0 %v2043_v12 }
 0x1b5   :  { %v346_v15 = vmul.f32 %v1871_v23, %v319_v24  ;;  %v349_v38 = vmul.f32 %v337_v3, %v313_v32  ;;  %v761_v20 = vpop.permute.xlu0 %760  ;;  %920 = vmatprep.subr.mxu0 %v854_v39 }
 0x1b6   :  { %921 = vmatpush1.msra.mxu0 %v853_v1  ;;  %v840_v55 = vld [vmem:[#allocation2 + $0x78] sm:$0xff] }
 0x1b7   :  { %354 = vst [vmem:[#allocation2 + $0x20] sm:$0x3] %v346_v15  ;;  %357 = vst [vmem:[#allocation2 + $0x38] sm:$0x3] %v349_v38  ;;  %1005 = vmatprep.subr.mxu1 %v840_v55  ;;  %v757_v9 = vpop.permute.xlu1 %756  ;;  %922 = vmatprep.subr.mxu0 %v2044_v0 }
 0x1b8   :  { %v770_v23 = vsel %vm766_vm11, %v757_v9, %v761_v20  ;;  %v772_v26 = vsel %vm766_vm11, %v753_v58, %v757_v9  ;;  %923 = vmatpush1.msra.mxu0 %v2045_v27  ;;  %1006 = vmatpush1.msra.mxu1 %v839_v30 }
 0x1b9   :  { %v802_v59 = vmul.f32 %v781_v52, %v772_v26  ;;  %v803_v56 = vmul.f32 %v785_v19, %v770_v23  ;;  %1007 = vmatprep.subr.mxu1 %v1839_v34  ;;  %v751_v44 = vpop.permute.xlu0 %750  ;;  %924 = vmatprep.subr.mxu0 %v846_v43 }
 0x1ba   :  { %v771_v36 = vsel %vm766_vm11, %v751_v44, %v2046_v63  ;;  %925 = vmatpush1.msra.mxu0 %v845_v29  ;;  %1008 = vmatpush1.msra.mxu1 %v1836_v6  ;;  %v837_v6 = vld [vmem:[#allocation2 + $0x60] sm:$0xff]  ;;  %v831_v10 = vld [vmem:[#allocation2 + $0x30] sm:$0xff]  ;;  %v830_v2 = vld [vmem:[#allocation2 + $0x28] sm:$0xff] }
 0x1bb   :  { %810 = vst [vmem:[#allocation2 + $0x220] sm:$0x3] %v802_v59  ;;  %811 = vst [vmem:[#allocation2 + $0x228] sm:$0x3] %v803_v56  ;;  %v798_v8 = vmul.f32 %v781_v52, %v771_v36  ;;  %v765_v48 = vpop.permute.xlu1 %764  ;;  %926 = vmatprep.subr.mxu0 %v2047_v54 }
 0x1bc   :  { %v768_v34 = vsel %vm766_vm11, %v761_v20, %v765_v48  ;;  %v774_v3 = vsel %vm766_vm11, %v765_v48, %v753_v58  ;;  %927 = vmatpush1.msra.mxu0 %v2048_v49  ;;  %v821_v58 = vld [vmem:[%s2020_s2] sm:$0xff] }
 0x1bd   :  { %v804_v62 = vmul.f32 %v789_v45, %v768_v34  ;;  %v805_v46 = vmul.f32 %v793_v31, %v774_v3  ;;  %v759_v18 = vpop.permute.xlu0 %758  ;;  %928 = vmatprep.subr.mxu0 %v838_v41 }
 0x1be   :  { %v769_v4 = vsel %vm766_vm11, %v2046_v63, %v759_v18  ;;  %929 = vmatpush1.msra.mxu0 %v837_v6  ;;  %v832_v13 = vld [vmem:[#allocation2 + $0x38] sm:$0xff]  ;;  %v829_v5 = vld [vmem:[#allocation2 + $0x20] sm:$0xff] }
 0x1bf   :  { %812 = vst [vmem:[#allocation2 + $0x230] sm:$0x3] %v804_v62  ;;  %813 = vst [vmem:[#allocation2 + $0x238] sm:$0x3] %v805_v46  ;;  %v799_v17 = vmul.f32 %v785_v19, %v769_v4  ;;  %v763_v47 = vpop.permute.xlu1 %762  ;;  %930 = vmatprep.subr.mxu0 %v2049_v22  ;;  %1009 = vmatprep.subr.mxu1 %v832_v13 }
 0x1c0   :  { %v767_v50 = vsel %vm766_vm11, %v759_v18, %v763_v47  ;;  %v773_v51 = vsel %vm766_vm11, %v763_v47, %v751_v44  ;;  %931 = vmatpush1.msra.mxu0 %v2050_v11  ;;  %1010 = vmatpush1.msra.mxu1 %v831_v10 }
 0x1c1   :  { %v800_v40 = vmul.f32 %v789_v45, %v767_v50  ;;  %v801_v33 = vmul.f32 %v793_v31, %v773_v51  ;;  %932 = vmatprep.subr.mxu0 %v830_v2  ;;  %1011 = vmatprep.subr.mxu1 %v1915_v16 }
 0x1c2   :  { %933 = vmatpush1.msra.mxu0 %v829_v5  ;;  %1012 = vmatpush1.msra.mxu1 %v1913_v7  ;;  %v894_v28 = vld [vmem:[#allocation2 + $0x228] sm:$0xff]  ;;  %v893_v42 = vld [vmem:[#allocation2 + $0x220] sm:$0xff]  ;;  %v824_v7 = vld [vmem:[%s2020_s2 + $0x18] sm:$0x3] }
 0x1c3   :  { %934 = vmatprep.subr.mxu0 %v1893_v60 }
 0x1c4   :  { %935 = vmatpush1.msra.mxu0 %v1891_v53  ;;  %v823_v53 = vld [vmem:[%s2020_s2 + $0x10] sm:$0x3] }
 0x1c5   :  { %964 = vmatprep.subr.mxu0 %v894_v28 }
 0x1c6   :  { %965 = vmatpush2.msra.mxu0 %v893_v42  ;;  %v896_v25 = vld [vmem:[#allocation2 + $0x238] sm:$0xff]  ;;  %v895_v57 = vld [vmem:[#allocation2 + $0x230] sm:$0xff] }
 0x1c7   :  { %1041 = vmatprep.subr.mxu1 %v896_v25  ;;  %966 = vmatprep.subr.mxu0 %v799_v17 }
 0x1c8   :  { %1042 = vmatpush2.msra.mxu1 %v895_v57  ;;  %967 = vmatpush2.msra.mxu0 %v798_v8 }
 0x1c9   :  { %969 = vmatmul.mubr.f32.vlgmr.msra.gmra.mxu0 %v821_v58  ;;  %1043 = vmatprep.subr.mxu1 %v801_v33 }
 0x1ca   :  { %1044 = vmatpush2.msra.mxu1 %v800_v40  ;;  %1187 = vmatprep.mubr.msk.f32.mxu0 %vm897_vm4, %v824_v7 }
 0x1cb   :  { %1046 = vmatmul.mubr.f32.vlgmr.msra.gmra.mxu1 %v821_v58 }
 0x1cc   :  { %1189 = vmatprep.mubr.msk.f32.mxu1 %vm897_vm4, %v824_v7 }
 0x1cd   :  { %975 = vmatmul.mubr.f32.gmra.mxu0 %v823_v53 }
 0x1cf   :  { %1052 = vmatmul.mubr.f32.gmra.mxu1 %v823_v53 }
 0x289   :  { %v970_v60 = vpop.f32.mrf.mxu0 }
 0x28b   :  { %v972_v16 = vpop.f32.mrf.mxu0  ;;  %v1047_v21 = vpop.f32.mrf.mxu1 }
 0x28d   :  { %v976_v61 = vpop.f32.mrf.mxu0  ;;  %v1049_v35 = vpop.f32.mrf.mxu1 }
 0x28e   :  { %v1059_v14 = vsel %vm1058_vm12, %v976_v61, -inf }
 0x28f   :  { %v1060_v37 = vmax.f32 %v970_v60, %v1059_v14  ;;  %v978_v32 = vpop.f32.mrf.mxu0  ;;  %v1053_v24 = vpop.f32.mrf.mxu1 }
 0x290   :  { %v1067_v12 = vsel %vm1058_vm12, %v978_v32, -inf  ;;  %v1075_v39 = vsel %vm1058_vm12, %v1053_v24, -inf }
 0x291   :  { %v1061_v15 = vrot.slane %v1060_v37, 4  ;;  %v1068_v38 = vmax.f32 %v972_v16, %v1067_v12  ;;  %v1076_v20 = vmax.f32 %v1047_v21, %v1075_v39  ;;  %v1055_v1 = vpop.f32.mrf.mxu1 }
 0x292   :  { %v1083_v52 = vsel %vm1058_vm12, %v1055_v1, -inf }
 0x293   :  { %v1062_v19 = vmax.f32 %v1060_v37, %v1061_v15  ;;  %v1069_v55 = vrot.slane %v1068_v38, 4  ;;  %v1077_v9 = vrot.slane %v1076_v20, 4  ;;  %v1084_v0 = vmax.f32 %v1049_v35, %v1083_v52 }
 0x295   :  { %v1063_v30 = vrot.slane %v1062_v19, 2  ;;  %v1070_v23 = vmax.f32 %v1068_v38, %v1069_v55  ;;  %v1078_v26 = vmax.f32 %v1076_v20, %v1077_v9  ;;  %v1085_v27 = vrot.slane %v1084_v0, 4 }
 0x297   :  { %v1064_v43 = vmax.f32 %v1062_v19, %v1063_v30  ;;  %v1071_v45 = vrot.slane %v1070_v23, 2  ;;  %v1079_v59 = vrot.slane %v1078_v26, 2  ;;  %v1086_v56 = vmax.f32 %v1084_v0, %v1085_v27 }
 0x299   :  { %v1065_v44 = vrot.slane %v1064_v43, 1  ;;  %v1072_v29 = vmax.f32 %v1070_v23, %v1071_v45  ;;  %v1080_v31 = vmax.f32 %v1078_v26, %v1079_v59  ;;  %v1087_v63 = vrot.slane %v1086_v56, 2 }
 0x29b   :  { %v1066_v36 = vmax.f32 %v1064_v43, %v1065_v44  ;;  %v1073_v8 = vrot.slane %v1072_v29, 1  ;;  %v1081_v48 = vrot.slane %v1080_v31, 1  ;;  %v1088_v54 = vmax.f32 %v1086_v56, %v1087_v63 }
 0x29d   :  { %v1091_v34 = vsub.f32 %v970_v60, %v1066_v36  ;;  %v1095_v3 = vsub.f32 %v976_v61, %v1066_v36  ;;  %v1074_v49 = vmax.f32 %v1072_v29, %v1073_v8  ;;  %v1082_v41 = vmax.f32 %v1080_v31, %v1081_v48 }
 0x29e   :  { %v1089_v62 = vrot.slane %v1088_v54, 1 }
 0x29f   :  { %v1099_v46 = vmul.f32 1.442695, %v1091_v34  ;;  %v1107_v18 = vmul.f32 1.442695, %v1095_v3  ;;  %v1092_v6 = vsub.f32 %v972_v16, %v1074_v49  ;;  %v1096_v4 = vsub.f32 %v978_v32, %v1074_v49 }
 0x2a0   :  { %v1093_v13 = vsub.f32 %v1047_v21, %v1082_v41  ;;  %v1097_v17 = vsub.f32 %v1053_v24, %v1082_v41  ;;  %v1090_v47 = vmax.f32 %v1088_v54, %v1089_v62 }
 0x2a1   :  { %1200 = vpow2.f32 %v1099_v46  ;;  %v1101_v22 = vmul.f32 1.442695, %v1092_v6  ;;  %v1109_v10 = vmul.f32 1.442695, %v1096_v4 }
 0x2a2   :  { %1202 = vpow2.f32 %v1107_v18  ;;  %v1103_v50 = vmul.f32 1.442695, %v1093_v13  ;;  %v1111_v51 = vmul.f32 1.442695, %v1097_v17  ;;  %v1094_v11 = vsub.f32 %v1049_v35, %v1090_v47 }
 0x2a3   :  { %1204 = vpow2.f32 %v1101_v22  ;;  %v1098_v2 = vsub.f32 %v1055_v1, %v1090_v47 }
 0x2a4   :  { %1206 = vpow2.f32 %v1109_v10  ;;  %v1105_v40 = vmul.f32 1.442695, %v1094_v11 }
 0x2a5   :  { %1208 = vpow2.f32 %v1103_v50  ;;  %v1113_v33 = vmul.f32 1.442695, %v1098_v2 }
 0x2a6   :  { %1210 = vpow2.f32 %v1111_v51 }
 0x2a7   :  { %1212 = vpow2.f32 %v1105_v40 }
 0x2a8   :  { %1214 = vpow2.f32 %v1113_v33 }
 0x2ae   :  { %v1201_v5 = vpop.eup %1200 }
 0x2af   :  { %v1203_v28 = vpop.eup %1202 }
 0x2b0   :  { %v1205_v42 = vpop.eup %1204  ;;  %v1115_v25 = vsel %vm1058_vm12, %v1203_v28, 0.0 }
 0x2b1   :  { %v1207_v57 = vpop.eup %1206  ;;  %v1116_v58 = vadd.f32 %v1201_v5, %v1115_v25 }
 0x2b2   :  { %v1209_v7 = vpop.eup %1208  ;;  %v1123_v53 = vsel %vm1058_vm12, %v1207_v57, 0.0 }
 0x2b3   :  { %v1211_v60 = vpop.eup %1210  ;;  %v1117_v16 = vrot.slane %v1116_v58, 4  ;;  %v1124_v21 = vadd.f32 %v1205_v42, %v1123_v53 }
 0x2b4   :  { %v1213_v61 = vpop.eup %1212  ;;  %v1131_v35 = vsel %vm1058_vm12, %v1211_v60, 0.0 }
 0x2b5   :  { %v1215_v14 = vpop.eup %1214  ;;  %v1118_v37 = vadd.f32 %v1117_v16, %v1116_v58  ;;  %v1125_v32 = vrot.slane %v1124_v21, 4  ;;  %v1132_v24 = vadd.f32 %v1209_v7, %v1131_v35 }
 0x2b6   :  { %v1139_v12 = vsel %vm1058_vm12, %v1215_v14, 0.0 }
 0x2b7   :  { %v1119_v39 = vrot.slane %v1118_v37, 2  ;;  %v1126_v15 = vadd.f32 %v1125_v32, %v1124_v21  ;;  %v1133_v38 = vrot.slane %v1132_v24, 4  ;;  %v1140_v20 = vadd.f32 %v1213_v61, %v1139_v12 }
 0x2b9   :  { %v1120_v1 = vadd.f32 %v1119_v39, %v1118_v37  ;;  %v1127_v52 = vrot.slane %v1126_v15, 2  ;;  %v1134_v19 = vadd.f32 %v1133_v38, %v1132_v24  ;;  %v1141_v55 = vrot.slane %v1140_v20, 4 }
 0x2bb   :  { %v1121_v9 = vrot.slane %v1120_v1, 1  ;;  %v1128_v0 = vadd.f32 %v1127_v52, %v1126_v15  ;;  %v1135_v30 = vrot.slane %v1134_v19, 2  ;;  %v1142_v23 = vadd.f32 %v1141_v55, %v1140_v20 }
 0x2bd   :  { %v1122_v26 = vadd.f32 %v1121_v9, %v1120_v1  ;;  %v1129_v27 = vrot.slane %v1128_v0, 1  ;;  %v1136_v43 = vadd.f32 %v1135_v30, %v1134_v19  ;;  %v1143_v45 = vrot.slane %v1142_v23, 2 }
 0x2bf   :  { %1216 = vrcp.f32 %v1122_v26  ;;  %v1130_v59 = vadd.f32 %v1129_v27, %v1128_v0  ;;  %v1137_v56 = vrot.slane %v1136_v43, 1  ;;  %v1144_v44 = vadd.f32 %v1143_v45, %v1142_v23 }
 0x2c1   :  { %1218 = vrcp.f32 %v1130_v59  ;;  %v1138_v29 = vadd.f32 %v1137_v56, %v1136_v43  ;;  %v1145_v31 = vrot.slane %v1144_v44, 1 }
 0x2c3   :  { %1220 = vrcp.f32 %v1138_v29  ;;  %v1146_v63 = vadd.f32 %v1145_v31, %v1144_v44 }
 0x2c5   :  { %1222 = vrcp.f32 %v1146_v63 }
 0x2cc   :  { %v1217_v36 = vpop.eup %1216 }
 0x2cd   :  { %v1151_v8 = vmul.f32 %v1217_v36, %v1201_v5  ;;  %v1155_v48 = vmul.f32 %v1217_v36, %v1203_v28 }
 0x2ce   :  { %v1219_v54 = vpop.eup %1218 }
 0x2cf   :  { %1159 = vst [vmem:[%s2021_s4] sm:$0xff] %v1151_v8  ;;  %1163 = vst [vmem:[%s2021_s4 + $0x20] sm:$0x3] %v1155_v48  ;;  %v1152_v34 = vmul.f32 %v1219_v54, %v1205_v42  ;;  %v1156_v3 = vmul.f32 %v1219_v54, %v1207_v57 }
 0x2d0   :  { %v1221_v49 = vpop.eup %1220 }
 0x2d1   :  { %1160 = vst [vmem:[%s2021_s4 + $0x8] sm:$0xff] %v1152_v34  ;;  %1164 = vst [vmem:[%s2021_s4 + $0x28] sm:$0x3] %v1156_v3  ;;  %v1153_v41 = vmul.f32 %v1221_v49, %v1209_v7  ;;  %v1157_v62 = vmul.f32 %v1221_v49, %v1211_v60 }
 0x2d2   :  { %v1223_v46 = vpop.eup %1222 }
 0x2d3   :  { %1161 = vst [vmem:[%s2021_s4 + $0x10] sm:$0xff] %v1153_v41  ;;  %1165 = vst [vmem:[%s2021_s4 + $0x30] sm:$0x3] %v1157_v62  ;;  %v1154_v18 = vmul.f32 %v1223_v46, %v1213_v61  ;;  %v1158_v6 = vmul.f32 %v1223_v46, %v1215_v14 }
 0x2d5   :  { %1162 = vst [vmem:[%s2021_s4 + $0x18] sm:$0xff] %v1154_v18  ;;  %1166 = vst [vmem:[%s2021_s4 + $0x38] sm:$0x3] %v1158_v6 }

</bundles_post_ra>
